<compile_context>
chip_gen: v5e
topology: v5e:2x2
jax: 0.10.0
libtpu: 0.0.40
codegen_flags: <defaults>
</compile_context>

<pallas_src>
import functools
import math

import jax
import jax.numpy as jnp
from jax.experimental import pallas as pl
from jax.experimental.pallas import tpu as pltpu


# ----------------------------- small test config -----------------------------
BATCH = 2
SEQ = 8
IN_FEATURES = 32
HIDDEN_FEATURES = 4 * IN_FEATURES   # 128  (timm default mlp_ratio=4)
OUT_FEATURES = IN_FEATURES          # 32


def _round_up(x, m):
    return ((x + m - 1) // m) * m


# ----------------------------- in-kernel helpers -----------------------------
def _erf(x):
    # Abramowitz & Stegun 7.1.26 polynomial, |abs err| < 1.5e-7 (~f32 eps); matches the
    # exact erf required by nn.GELU() (approximate='none') to f32 precision.
    a1, a2, a3, a4, a5 = 0.254829592, -0.284496736, 1.421413741, -1.453152027, 1.061405429
    p = 0.3275911
    sgn = jnp.where(x >= 0.0, 1.0, -1.0)
    ax = jnp.abs(x)
    t = 1.0 / (1.0 + p * ax)
    poly = ((((a5 * t + a4) * t + a3) * t + a2) * t + a1) * t
    return sgn * (1.0 - poly * jnp.exp(-ax * ax))


def _gelu(x):
    return 0.5 * x * (1.0 + _erf(x * 0.7071067811865476))


# ----------------------------- fused MLP kernel -----------------------------
def _mlp_kernel(x_ref, w1_ref, b1_ref, w2_ref, b2_ref, o_ref):
    # x_ref: (tile_m, D_in); w1: (D_in, D_hid_pad); w2: (D_hid_pad, D_out_pad)
    x = x_ref[...]
    h = jnp.dot(x, w1_ref[...], preferred_element_type=jnp.float32) + b1_ref[...]
    h = _gelu(h)
    y = jnp.dot(h, w2_ref[...], preferred_element_type=jnp.float32) + b2_ref[...]
    o_ref[...] = y.astype(o_ref.dtype)


def pallas_mlp(x, w1, b1, w2, b2, *, tile_m=128):
    """Fused fc1 -> exact GELU -> fc2.

    x : (..., d_in); w1 : (d_in, d_hid); b1 : (d_hid,); w2 : (d_hid, d_out); b2 : (d_out,)
    (weights are stored transposed relative to PyTorch's nn.Linear (out, in) layout).
    """
    orig_lead = x.shape[:-1]
    d_in = x.shape[-1]
    d_hid = w1.shape[1]
    d_out = w2.shape[1]
    m = int(math.prod(orig_lead)) if orig_lead else 1

    # Lane-dense padding of hidden / output feature dims (zero columns/rows keep the
    # math identical; GELU(0) = 0 so padded hidden lanes contribute nothing to fc2).
    d_hid_p = _round_up(d_hid, 128)
    d_out_p = _round_up(d_out, 128)
    # Row (M) padding: multiple of 8 sublanes; multiple of tile_m when tiling kicks in.
    m_p = _round_up(m, 8) if m <= tile_m else _round_up(m, tile_m)
    tile = min(tile_m, m_p)

    x2 = x.reshape(m, d_in)
    if m_p != m:
        x2 = jnp.pad(x2, ((0, m_p - m), (0, 0)))
    w1p = jnp.pad(w1, ((0, 0), (0, d_hid_p - d_hid)))
    b1p = jnp.pad(b1, (0, d_hid_p - d_hid)).reshape(1, d_hid_p)
    w2p = jnp.pad(w2, ((0, d_hid_p - d_hid), (0, d_out_p - d_out)))
    b2p = jnp.pad(b2, (0, d_out_p - d_out)).reshape(1, d_out_p)

    grid = (m_p // tile,)
    out = pl.pallas_call(
        _mlp_kernel,
        out_shape=jax.ShapeDtypeStruct((m_p, d_out_p), jnp.float32),
        grid=grid,
        in_specs=[
            pl.BlockSpec((tile, d_in), lambda i: (i, 0)),
            pl.BlockSpec((d_in, d_hid_p), lambda i: (0, 0)),
            pl.BlockSpec((1, d_hid_p), lambda i: (0, 0)),
            pl.BlockSpec((d_hid_p, d_out_p), lambda i: (0, 0)),
            pl.BlockSpec((1, d_out_p), lambda i: (0, 0)),
        ],
        out_specs=pl.BlockSpec((tile, d_out_p), lambda i: (i, 0)),
        compiler_params=pltpu.CompilerParams(
            dimension_semantics=("parallel",)),  # row tiles split across TCs on v7x
    )(x2, w1p, b1p, w2p, b2p)

    return out[:m, :d_out].reshape(*orig_lead, d_out)


# ----------------------------- pure-JAX reference -----------------------------
def mlp_ref(x, w1, b1, w2, b2):
    h = x @ w1 + b1
    h = 0.5 * h * (1.0 + jax.scipy.special.erf(h * 0.7071067811865476))
    return h @ w2 + b2


# ----------------------------- parameter init (nn.Linear-style) -----------------------------
def init_params(key):
    k1, k2, k3, k4 = jax.random.split(key, 4)
    bound1 = 1.0 / math.sqrt(IN_FEATURES)
    bound2 = 1.0 / math.sqrt(HIDDEN_FEATURES)
    w1 = jax.random.uniform(k1, (IN_FEATURES, HIDDEN_FEATURES), jnp.float32, -bound1, bound1)
    b1 = jax.random.uniform(k2, (HIDDEN_FEATURES,), jnp.float32, -bound1, bound1)
    w2 = jax.random.uniform(k3, (HIDDEN_FEATURES, OUT_FEATURES), jnp.float32, -bound2, bound2)
    b2 = jax.random.uniform(k4, (OUT_FEATURES,), jnp.float32, -bound2, bound2)
    return w1, b1, w2, b2


if __name__ == "__main__":
    key = jax.random.PRNGKey(0)
    kp, kx = jax.random.split(key)
    w1, b1, w2, b2 = init_params(kp)

    x = jax.random.normal(kx, (BATCH, SEQ, IN_FEATURES), jnp.float32)

    fused = jax.jit(functools.partial(pallas_mlp, tile_m=128))
    out = fused(x, w1, b1, w2, b2)
    jax.block_until_ready(out)

    ref = mlp_ref(x, w1, b1, w2, b2)
    assert out.shape == (BATCH, SEQ, OUT_FEATURES)
    assert bool(jnp.allclose(out, ref, atol=1e-4, rtol=1e-4)), "mismatch vs reference"

    print("KERNEL_OK")
</pallas_src>

<mosaic_0001>
module attributes {stable_mosaic.version = 11 : i64} {
  func.func @_mlp_kernel(%arg0: i32, %arg1: memref<16x32xf32, #tpu.memory_space<vmem>>, %arg2: memref<32x128xf32, #tpu.memory_space<vmem>>, %arg3: memref<1x128xf32, #tpu.memory_space<vmem>>, %arg4: memref<128x128xf32, #tpu.memory_space<vmem>>, %arg5: memref<1x128xf32, #tpu.memory_space<vmem>>, %arg6: memref<16x128xf32, #tpu.memory_space<vmem>>) attributes {dimension_semantics = [#tpu.dimension_semantics<parallel>], iteration_bounds = array<i64: 1>, scalar_prefetch = 0 : i64, scratch_operands = 0 : i64, tpu.core_type = #tpu.core_type<tc>, window_params = [{transform_indices = @transform_0, window_bounds = array<i64: 16, 32>}, {pipeline_mode = #tpu.pipeline_mode<synchronous>, transform_indices = @transform_1, window_bounds = array<i64: 32, 128>}, {pipeline_mode = #tpu.pipeline_mode<synchronous>, transform_indices = @transform_2, window_bounds = array<i64: 1, 128>}, {pipeline_mode = #tpu.pipeline_mode<synchronous>, transform_indices = @transform_3, window_bounds = array<i64: 128, 128>}, {pipeline_mode = #tpu.pipeline_mode<synchronous>, transform_indices = @transform_4, window_bounds = array<i64: 1, 128>}, {transform_indices = @transform_5, window_bounds = array<i64: 16, 128>}]} {
    %c0 = arith.constant 0 : index
    %c0_0 = arith.constant 0 : index
    %0 = vector.load %arg1[%c0, %c0_0] : memref<16x32xf32, #tpu.memory_space<vmem>>, vector<16x32xf32>
    %c0_1 = arith.constant 0 : index
    %c0_2 = arith.constant 0 : index
    %1 = vector.load %arg2[%c0_1, %c0_2] : memref<32x128xf32, #tpu.memory_space<vmem>>, vector<32x128xf32>
    %cst = arith.constant dense<0.000000e+00> : vector<16x128xf32>
    %2 = tpu.matmul %0, %1, %cst {dimension_numbers = #tpu.dot_dimension_numbers<[1], [0], [0], [1], [0, 0, 1, 1], [], []>} : vector<16x32xf32>, vector<32x128xf32>, vector<16x128xf32> -> vector<16x128xf32>
    %c0_3 = arith.constant 0 : index
    %c0_4 = arith.constant 0 : index
    %3 = vector.load %arg3[%c0_3, %c0_4] : memref<1x128xf32, #tpu.memory_space<vmem>>, vector<1x128xf32>
    %4 = vector.broadcast %3 : vector<1x128xf32> to vector<16x128xf32>
    %5 = arith.addf %2, %4 : vector<16x128xf32>
    %cst_5 = arith.constant 5.000000e-01 : f32
    %6 = vector.broadcast %cst_5 : f32 to vector<16x128xf32>
    %7 = arith.mulf %6, %5 : vector<16x128xf32>
    %cst_6 = arith.constant 0.707106769 : f32
    %8 = vector.broadcast %cst_6 : f32 to vector<16x128xf32>
    %9 = arith.mulf %5, %8 : vector<16x128xf32>
    %cst_7 = arith.constant 0.000000e+00 : f32
    %10 = vector.broadcast %cst_7 : f32 to vector<16x128xf32>
    %11 = arith.cmpf oge, %9, %10 : vector<16x128xf32>
    %cst_8 = arith.constant 1.000000e+00 : f32
    %cst_9 = arith.constant -1.000000e+00 : f32
    %12 = vector.broadcast %cst_8 : f32 to vector<16x128xf32>
    %13 = vector.broadcast %cst_9 : f32 to vector<16x128xf32>
    %14 = arith.select %11, %12, %13 : vector<16x128xi1>, vector<16x128xf32>
    %15 = math.absf %9 : vector<16x128xf32>
    %cst_10 = arith.constant 0.327591091 : f32
    %16 = vector.broadcast %cst_10 : f32 to vector<16x128xf32>
    %17 = arith.mulf %16, %15 : vector<16x128xf32>
    %cst_11 = arith.constant 1.000000e+00 : f32
    %18 = vector.broadcast %cst_11 : f32 to vector<16x128xf32>
    %19 = arith.addf %18, %17 : vector<16x128xf32>
    %cst_12 = arith.constant 1.000000e+00 : f32
    %20 = vector.broadcast %cst_12 : f32 to vector<16x128xf32>
    %21 = arith.divf %20, %19 : vector<16x128xf32>
    %cst_13 = arith.constant 1.06140542 : f32
    %22 = vector.broadcast %cst_13 : f32 to vector<16x128xf32>
    %23 = arith.mulf %22, %21 : vector<16x128xf32>
    %cst_14 = arith.constant -1.45315206 : f32
    %24 = vector.broadcast %cst_14 : f32 to vector<16x128xf32>
    %25 = arith.addf %23, %24 : vector<16x128xf32>
    %26 = arith.mulf %25, %21 : vector<16x128xf32>
    %cst_15 = arith.constant 1.42141378 : f32
    %27 = vector.broadcast %cst_15 : f32 to vector<16x128xf32>
    %28 = arith.addf %26, %27 : vector<16x128xf32>
    %29 = arith.mulf %28, %21 : vector<16x128xf32>
    %cst_16 = arith.constant -0.284496725 : f32
    %30 = vector.broadcast %cst_16 : f32 to vector<16x128xf32>
    %31 = arith.addf %29, %30 : vector<16x128xf32>
    %32 = arith.mulf %31, %21 : vector<16x128xf32>
    %cst_17 = arith.constant 0.254829586 : f32
    %33 = vector.broadcast %cst_17 : f32 to vector<16x128xf32>
    %34 = arith.addf %32, %33 : vector<16x128xf32>
    %35 = arith.mulf %34, %21 : vector<16x128xf32>
    %cst_18 = arith.constant 0.000000e+00 : f32
    %36 = vector.broadcast %cst_18 : f32 to vector<16x128xf32>
    %37 = arith.subf %36, %15 : vector<16x128xf32>
    %38 = arith.mulf %37, %15 : vector<16x128xf32>
    %39 = math.exp %38 : vector<16x128xf32>
    %40 = arith.mulf %35, %39 : vector<16x128xf32>
    %cst_19 = arith.constant 1.000000e+00 : f32
    %41 = vector.broadcast %cst_19 : f32 to vector<16x128xf32>
    %42 = arith.subf %41, %40 : vector<16x128xf32>
    %43 = arith.mulf %14, %42 : vector<16x128xf32>
    %cst_20 = arith.constant 1.000000e+00 : f32
    %44 = vector.broadcast %cst_20 : f32 to vector<16x128xf32>
    %45 = arith.addf %44, %43 : vector<16x128xf32>
    %46 = arith.mulf %7, %45 : vector<16x128xf32>
    %c0_21 = arith.constant 0 : index
    %c0_22 = arith.constant 0 : index
    %47 = vector.load %arg4[%c0_21, %c0_22] : memref<128x128xf32, #tpu.memory_space<vmem>>, vector<128x128xf32>
    %cst_23 = arith.constant dense<0.000000e+00> : vector<16x128xf32>
    %48 = tpu.matmul %46, %47, %cst_23 {dimension_numbers = #tpu.dot_dimension_numbers<[1], [0], [0], [1], [0, 0, 1, 1], [], []>} : vector<16x128xf32>, vector<128x128xf32>, vector<16x128xf32> -> vector<16x128xf32>
    %c0_24 = arith.constant 0 : index
    %c0_25 = arith.constant 0 : index
    %49 = vector.load %arg5[%c0_24, %c0_25] : memref<1x128xf32, #tpu.memory_space<vmem>>, vector<1x128xf32>
    %50 = vector.broadcast %49 : vector<1x128xf32> to vector<16x128xf32>
    %51 = arith.addf %48, %50 : vector<16x128xf32>
    %c0_26 = arith.constant 0 : index
    %c0_27 = arith.constant 0 : index
    %52 = vector.load %arg6[%c0_26, %c0_27] : memref<16x128xf32, #tpu.memory_space<vmem>>, vector<16x128xf32>
    tpu.vector_store %arg6[%c0_26, %c0_27], %51 {strides = array<i32>} : memref<16x128xf32, #tpu.memory_space<vmem>>, vector<16x128xf32>,
    return
  }
  func.func @transform_0(%arg0: i32) -> (i32, i32) {
    %c0_i32 = arith.constant 0 : i32
    %c0_i32_0 = arith.constant 0 : i32
    return %arg0, %c0_i32 : i32, i32
  }
  func.func @transform_1(%arg0: i32) -> (i32, i32) {
    %c0_i32 = arith.constant 0 : i32
    %c0_i32_0 = arith.constant 0 : i32
    %c0_i32_1 = arith.constant 0 : i32
    return %c0_i32, %c0_i32_0 : i32, i32
  }
  func.func @transform_2(%arg0: i32) -> (i32, i32) {
    %c0_i32 = arith.constant 0 : i32
    %c0_i32_0 = arith.constant 0 : i32
    %c0_i32_1 = arith.constant 0 : i32
    return %c0_i32, %c0_i32_0 : i32, i32
  }
  func.func @transform_3(%arg0: i32) -> (i32, i32) {
    %c0_i32 = arith.constant 0 : i32
    %c0_i32_0 = arith.constant 0 : i32
    %c0_i32_1 = arith.constant 0 : i32
    return %c0_i32, %c0_i32_0 : i32, i32
  }
  func.func @transform_4(%arg0: i32) -> (i32, i32) {
    %c0_i32 = arith.constant 0 : i32
    %c0_i32_0 = arith.constant 0 : i32
    %c0_i32_1 = arith.constant 0 : i32
    return %c0_i32, %c0_i32_0 : i32, i32
  }
  func.func @transform_5(%arg0: i32) -> (i32, i32) {
    %c0_i32 = arith.constant 0 : i32
    %c0_i32_0 = arith.constant 0 : i32
    return %arg0, %c0_i32 : i32, i32
  }
}

</mosaic_0001>

<bundles_post_ra>
// kernel: pallas_mlp.1
= control target key start
LH: loop header
LB: loop body
LE: loop exit
PB: predicated region body
PF: predicated region fallthrough
CT: control target
= control target key end

     0   :  { %vm30_vm0 = vcmask 261120   ;;  %s348_s1 = inlined_call_operand.vmem [shape: f32[32,128], index: 1, kind: input, shape index: {}]   ;;  %s349_s2 = inlined_call_operand.vmem [shape: f32[1,128], index: 2, kind: input, shape index: {}]   ;;  %s350_s0 = inlined_call_operand.vmem [shape: f32[16,32], index: 0, kind: input, shape index: {}]   ;;  %s351_s4 = inlined_call_operand.vmem [shape: f32[1,128], index: 4, kind: input, shape index: {}]   ;;  %s352_s3 = inlined_call_operand.vmem [shape: f32[128,128], index: 3, kind: input, shape index: {}]   ;;  %s353_s5 = inlined_call_operand.vmem [shape: f32[16,128], index: 5, kind: output, shape index: {}]  }
   0x1   :  { %v25_v0 = vld [vmem:[%s348_s1 + $0x18] sm:$0xff]  ;;  %v24_v1 = vld [vmem:[%s348_s1 + $0x10] sm:$0xff]  ;;  %v23_v2 = vld [vmem:[%s348_s1 + $0x8] sm:$0xff] }
   0x2   :  { %49 = vmatpush.msra.mxu0 %v25_v0  ;;  %v22_v3 = vld [vmem:[%s348_s1] sm:$0xff]  ;;  %v21_v5 = vld [vmem:[%s350_s0 + $0x8] sm:$0xff]  ;;  %v155_v6 = vld [vmem:[%s352_s3 + $0x78] sm:$0xff] }
   0x3   :  { %v20_v4 = vld [vmem:[%s350_s0] sm:$0xff]  ;;  %160 = vmatpush.msra.mxu1 %v155_v6  ;;  %191 = vmatpush.msra.mxu2 %v155_v6  ;;  %v154_v7 = vld [vmem:[%s352_s3 + $0x70] sm:$0xff]  ;;  %v153_v8 = vld [vmem:[%s352_s3 + $0x68] sm:$0xff] }
   0x4   :  { %50 = vmatpush.msra.mxu0 %v24_v1  ;;  %v152_v9 = vld [vmem:[%s352_s3 + $0x60] sm:$0xff]  ;;  %v151_v11 = vld [vmem:[%s352_s3 + $0x58] sm:$0xff]  ;;  %v150_v13 = vld [vmem:[%s352_s3 + $0x50] sm:$0xff] }
   0x5   :  { %161 = vmatpush.msra.mxu1 %v154_v7  ;;  %192 = vmatpush.msra.mxu2 %v154_v7  ;;  %v208_v10 = vld [vmem:[%s349_s2] ss:$0 sm:$0xff]  ;;  %v149_v15 = vld [vmem:[%s352_s3 + $0x48] sm:$0xff]  ;;  %v147_v19 = vld [vmem:[%s352_s3 + $0x38] sm:$0xff] }
   0x6   :  { %51 = vmatpush.msra.mxu0 %v23_v2  ;;  %v148_v17 = vld [vmem:[%s352_s3 + $0x40] sm:$0xff]  ;;  %v146_v22 = vld [vmem:[%s352_s3 + $0x30] sm:$0xff]  ;;  %v145_v25 = vld [vmem:[%s352_s3 + $0x28] sm:$0xff] }
   0x7   :  { %162 = vmatpush.msra.mxu1 %v153_v8  ;;  %193 = vmatpush.msra.mxu2 %v153_v8  ;;  %v144_v27 = vld [vmem:[%s352_s3 + $0x20] sm:$0xff]  ;;  %v143_v29 = vld [vmem:[%s352_s3 + $0x18] sm:$0xff]  ;;  %v142_v31 = vld [vmem:[%s352_s3 + $0x10] sm:$0xff] }
   0x8   :  { %52 = vmatpush.msra.mxu0 %v22_v3  ;;  %v141_v35 = vld [vmem:[%s352_s3 + $0x8] sm:$0xff]  ;;  %v140_v37 = vld [vmem:[%s352_s3] sm:$0xff] }
   0x9   :  { %189 = vmatmul.msk.f32.vlgmr.msra.gmra.mxu0 %vm30_vm0, %v20_v4  ;;  %163 = vmatpush.msra.mxu1 %v152_v9 }
   0xa   :  { %194 = vmatpush.msra.mxu2 %v152_v9 }
   0xb   :  { %164 = vmatpush.msra.mxu1 %v151_v11 }
   0xc   :  { %195 = vmatpush.msra.mxu2 %v151_v11 }
   0xd   :  { %165 = vmatpush.msra.mxu1 %v150_v13 }
   0xe   :  { %196 = vmatpush.msra.mxu2 %v150_v13 }
   0xf   :  { %166 = vmatpush.msra.mxu1 %v149_v15 }
  0x10   :  { %197 = vmatpush.msra.mxu2 %v149_v15 }
  0x11   :  { %190 = vmatmul.msk.f32.gmra.mxu0 %vm30_vm0, %v21_v5  ;;  %167 = vmatpush.msra.mxu1 %v148_v17 }
  0x12   :  { %198 = vmatpush.msra.mxu2 %v148_v17 }
  0x13   :  { %168 = vmatpush.msra.mxu1 %v147_v19 }
  0x14   :  { %199 = vmatpush.msra.mxu2 %v147_v19 }
  0x15   :  { %169 = vmatpush.msra.mxu1 %v146_v22 }
  0x16   :  { %200 = vmatpush.msra.mxu2 %v146_v22 }
  0x17   :  { %170 = vmatpush.msra.mxu1 %v145_v25 }
  0x18   :  { %201 = vmatpush.msra.mxu2 %v145_v25 }
  0x19   :  { %171 = vmatpush.msra.mxu1 %v144_v27 }
  0x1a   :  { %202 = vmatpush.msra.mxu2 %v144_v27 }
  0x1b   :  { %172 = vmatpush.msra.mxu1 %v143_v29 }
  0x1c   :  { %203 = vmatpush.msra.mxu2 %v143_v29 }
  0x1d   :  { %173 = vmatpush.msra.mxu1 %v142_v31 }
  0x1e   :  { %204 = vmatpush.msra.mxu2 %v142_v31 }
  0x1f   :  { %174 = vmatpush.msra.mxu1 %v141_v35 }
  0x20   :  { %205 = vmatpush.msra.mxu2 %v141_v35 }
  0x21   :  { %175 = vmatpush.msra.mxu1 %v140_v37 }
  0x22   :  { %206 = vmatpush.msra.mxu2 %v140_v37 }
  0x86   :  { %v54_v12 = vpop.f32.mrf.mxu0 }
  0x87   :  { %v288_v14 = vadd.f32 %v208_v10, %v54_v12 }
  0x89   :  { %v294_v16 = vmul.f32 0.70710677, %v288_v14  ;;  %v60_v22 = vmul.f32 0.5, %v288_v14  ;;  %v209_v14 = vld [vmem:[%s351_s4] ss:$0 sm:$0xff] }
  0x8b   :  { %v300_v18 = vand.u32 2147483647, %v294_v16  ;;  %vm64_vm9 = vcmp.ge.f32.partialorder %v294_v16, 0.0 }
  0x8d   :  { %v70_v20 = vmul.f32 0.3275911, %v300_v18  ;;  %v122_v46 = vsub.f32 0.0, %v300_v18 }
  0x8e   :  { %v57_v21 = vpop.f32.mrf.mxu0 }
  0x8f   :  { %v72_v23 = vadd.f32 1.0, %v70_v20  ;;  %v309_v24 = vadd.f32 %v208_v10, %v57_v21  ;;  %v124_v54 = vmul.f32 %v122_v46, %v300_v18  ;;  %v218_v18 = vmov -1.0  }
  0x90   :  { %v66_v19 = vsel %vm64_vm9, 1.0, %v218_v18 }
  0x91   :  { %210 = vrcp.f32 %v72_v23  ;;  %v315_v26 = vmul.f32 0.70710677, %v309_v24  ;;  %v85_v38 = vand.u32 2147483648, %v72_v23  ;;  %v83_v40 = vand.u32 2147483647, %v72_v23 }
  0x92   :  { %vm79_vm2 = vweird.f32 %v72_v23  ;;  %v126_v60 = vmul.f32 1.442695, %v124_v54 }
  0x93   :  { %v69_v28 = vand.u32 2147483647, %v315_v26  ;;  %v86_v43 = vor.u32 1.1754944e-38, %v85_v38  ;;  %vm84_vm4 = vcmp.eq.f32.partialorder %v83_v40, 8.507059e+37  ;;  %vm65_vm10 = vcmp.ge.f32.partialorder %v315_v26, 0.0 }
  0x95   :  { %v71_v30 = vmul.f32 0.3275911, %v69_v28  ;;  %v123_v61 = vsub.f32 0.0, %v69_v28 }
  0x97   :  { %v211_v32 = vpop.eup %210  ;;  %v73_v33 = vadd.f32 1.0, %v71_v30  ;;  %v125_v3 = vmul.f32 %v123_v61, %v69_v28  ;;  %v67_v30 = vsel %vm65_vm10, 1.0, %v218_v18 }
  0x98   :  { %v75_v34 = vmul.f32 %v211_v32, %v72_v23  ;;  %vm80_vm1 = vweird.f32 %v211_v32 }
  0x99   :  { %212 = vrcp.f32 %v73_v33  ;;  %vm81_vm3 = vmor %vm79_vm2, %vm80_vm1  ;;  %v100_v50 = vand.u32 2147483648, %v73_v33  ;;  %v98_v53 = vand.u32 2147483647, %v73_v33  ;;  %vm94_vm6 = vweird.f32 %v73_v33 }
  0x9a   :  { %v76_v36 = vsub.f32 1.0, %v75_v34  ;;  %214 = vpow2.f32 %v126_v60  ;;  %v128_v8 = vmul.f32 1.442695, %v125_v3 }
  0x9b   :  { %v101_v57 = vor.u32 1.1754944e-38, %v100_v50  ;;  %vm99_vm8 = vcmp.eq.f32.partialorder %v98_v53, 8.507059e+37 }
  0x9c   :  { %v77_v39 = vmul.f32 %v211_v32, %v76_v36  ;;  %216 = vpow2.f32 %v128_v8 }
  0x9e   :  { %v78_v41 = vadd.f32 %v211_v32, %v77_v39 }
  0x9f   :  { %v213_v42 = vpop.eup %212 }
  0xa0   :  { %v90_v44 = vmul.f32 %v213_v42, %v73_v33  ;;  %v82_v45 = vsel %vm81_vm3, %v211_v32, %v78_v41  ;;  %vm95_vm5 = vweird.f32 %v213_v42  ;;  %v215_v11 = vpop.eup %214  ;;  %v61_v32 = vmul.f32 0.5, %v309_v24 }
  0xa1   :  { %v87_v47 = vsel %vm84_vm4, %v86_v43, %v82_v45  ;;  %vm96_vm7 = vmor %vm94_vm6, %vm95_vm5 }
  0xa2   :  { %v91_v48 = vsub.f32 1.0, %v90_v44  ;;  %v104_v49 = vmul.f32 1.0614054, %v87_v47  ;;  %v217_v27 = vpop.eup %216 }
  0xa4   :  { %v106_v51 = vadd.f32 -1.4531521, %v104_v49  ;;  %v92_v52 = vmul.f32 %v213_v42, %v91_v48 }
  0xa6   :  { %v108_v55 = vmul.f32 %v106_v51, %v87_v47  ;;  %v93_v56 = vadd.f32 %v213_v42, %v92_v52 }
  0xa8   :  { %v110_v58 = vadd.f32 1.4214138, %v108_v55  ;;  %v97_v59 = vsel %vm96_vm7, %v213_v42, %v93_v56 }
  0xa9   :  { %v102_v62 = vsel %vm99_vm8, %v101_v57, %v97_v59 }
  0xaa   :  { %v112_v63 = vmul.f32 %v110_v58, %v87_v47  ;;  %v105_v0 = vmul.f32 1.0614054, %v102_v62 }
  0xac   :  { %v114_v1 = vadd.f32 -0.28449672, %v112_v63  ;;  %v107_v2 = vadd.f32 -1.4531521, %v105_v0 }
  0xae   :  { %v116_v4 = vmul.f32 %v114_v1, %v87_v47  ;;  %v109_v5 = vmul.f32 %v107_v2, %v102_v62 }
  0xb0   :  { %v118_v6 = vadd.f32 0.2548296, %v116_v4  ;;  %v111_v7 = vadd.f32 1.4214138, %v109_v5 }
  0xb2   :  { %v120_v9 = vmul.f32 %v118_v6, %v87_v47  ;;  %v113_v10 = vmul.f32 %v111_v7, %v102_v62 }
  0xb4   :  { %v130_v12 = vmul.f32 %v215_v11, %v120_v9  ;;  %v115_v13 = vadd.f32 -0.28449672, %v113_v10 }
  0xb6   :  { %v132_v15 = vsub.f32 1.0, %v130_v12  ;;  %v117_v17 = vmul.f32 %v115_v13, %v102_v62 }
  0xb8   :  { %v134_v20 = vmul.f32 %v132_v15, %v66_v19  ;;  %v119_v21 = vadd.f32 0.2548296, %v117_v17 }
  0xba   :  { %v136_v23 = vadd.f32 1.0, %v134_v20  ;;  %v121_v25 = vmul.f32 %v119_v21, %v102_v62 }
  0xbc   :  { %v138_v28 = vmul.f32 %v136_v23, %v60_v22  ;;  %v131_v29 = vmul.f32 %v217_v27, %v121_v25 }
  0xbe   :  { %176 = vmatmul.f32.vlgmr.msra.gmra.mxu1 %v138_v28  ;;  %v133_v16 = vsub.f32 1.0, %v131_v29 }
  0xc0   :  { %v135_v31 = vmul.f32 %v133_v16, %v67_v30 }
  0xc2   :  { %v137_v33 = vadd.f32 1.0, %v135_v31 }
  0xc4   :  { %v139_v34 = vmul.f32 %v137_v33, %v61_v32 }
  0xc6   :  { %179 = vmatmul.f32.vlgmr.msra.gmra.mxu2 %v139_v34 }
 0x13b   :  { %v177_v35 = vpop.f32.mrf.mxu1 }
 0x13c   :  { %v178_v36 = vadd.f32 %v209_v14, %v177_v35 }
 0x13e   :  { %183 = vst [vmem:[%s353_s5] sm:$0xff] %v178_v36 }
 0x149   :  { %v180_v26 = vpop.f32.mrf.mxu2 }
 0x14a   :  { %v181_v37 = vadd.f32 %v209_v14, %v180_v26 }
 0x14c   :  { %184 = vst [vmem:[%s353_s5 + $0x8] sm:$0xff] %v181_v37 }

</bundles_post_ra>
